<compile_context>
chip_gen: v7x
topology: tpu7x:2x2x1
jax: 0.10.0
libtpu: 0.0.40
codegen_flags: <defaults>
</compile_context>

<pallas_src>
import jax
import jax.numpy as jnp
from jax.experimental import pallas as pl
from jax.experimental.pallas import tpu as pltpu


def _round_up(x, m):
    return ((x + m - 1) // m) * m


def spec2state_kernel(x_ref, w1_ref, b1_ref, w2_ref, b2_ref, o_ref):
    # Hidden layer: (TB, Kp)bf16 @ (Kp, 512)bf16 -> f32 acc, + bias, ReLU.
    h = jnp.dot(x_ref[...], w1_ref[...], preferred_element_type=jnp.float32)
    h = jnp.maximum(h + b1_ref[...], 0.0)
    # Output layer: (TB, 512)bf16 @ (512, Cp)bf16 -> f32 acc, + bias.
    out = jnp.dot(h.astype(w2_ref.dtype), w2_ref[...],
                  preferred_element_type=jnp.float32)
    o_ref[...] = (out + b2_ref[...]).astype(o_ref.dtype)


def spec2state(x, w1, b1, w2, b2, *, block_b=512):
    """x: (B, 200) f32; w1: (200, 512); b1: (512,)|(1,512); w2: (512, C); b2: (C,)|(1,C)."""
    B, K = x.shape
    H = w1.shape[1]
    C = w2.shape[1]

    # Lane-aligned padded dims.
    Kp = _round_up(K, 128)          # 200 -> 256
    Cp = _round_up(C, 128)          # 10  -> 128
    TB = min(block_b, _round_up(B, 8))   # batch tile, multiple of 8, VMEM-safe on v7x
    Bp = _round_up(B, TB)
    nb = Bp // TB

    # Zero-pad + cast once in the wrapper (pads are exact zeros -> no contribution).
    xp = jnp.zeros((Bp, Kp), jnp.bfloat16).at[:B, :K].set(x.astype(jnp.bfloat16))
    w1p = jnp.zeros((Kp, H), jnp.bfloat16).at[:K, :].set(w1.astype(jnp.bfloat16))
    b1p = jnp.asarray(b1, jnp.float32).reshape(1, H)
    w2p = jnp.zeros((H, Cp), jnp.bfloat16).at[:, :C].set(w2.astype(jnp.bfloat16))
    b2p = jnp.zeros((1, Cp), jnp.float32).at[:, :C].set(
        jnp.asarray(b2, jnp.float32).reshape(1, C))

    flops = 2 * Bp * (Kp * H + H * Cp)
    bytes_accessed = (xp.size * 2 + w1p.size * 2 + w2p.size * 2
                      + b1p.size * 4 + b2p.size * 4 + Bp * Cp * 4)

    out = pl.pallas_call(
        spec2state_kernel,
        out_shape=jax.ShapeDtypeStruct((Bp, Cp), jnp.float32),
        grid=(nb,),
        in_specs=[
            pl.BlockSpec((TB, Kp), lambda i: (i, 0)),   # x tile, pipelined along batch
            pl.BlockSpec((Kp, H), lambda i: (0, 0)),    # w1, resident across grid
            pl.BlockSpec((1, H), lambda i: (0, 0)),     # b1, resident
            pl.BlockSpec((H, Cp), lambda i: (0, 0)),    # w2, resident
            pl.BlockSpec((1, Cp), lambda i: (0, 0)),    # b2, resident
        ],
        out_specs=pl.BlockSpec((TB, Cp), lambda i: (i, 0)),
        compiler_params=pltpu.CompilerParams(
            dimension_semantics=("parallel",)),
        cost_estimate=pl.CostEstimate(
            flops=flops, transcendentals=0, bytes_accessed=bytes_accessed),
    )(xp, w1p, b1p, w2p, b2p)

    return out[:B, :C]


def init_params(key, class_num):
    """Deterministic init mirroring nn.Linear defaults (U[-1/sqrt(fan_in), 1/sqrt(fan_in)])."""
    k1, k2, k3, k4 = jax.random.split(key, 4)
    in1, out1 = 200, 512
    in2, out2 = 512, class_num
    bnd1 = 1.0 / jnp.sqrt(in1)
    bnd2 = 1.0 / jnp.sqrt(in2)
    # Stored as (in, out) = PyTorch weight.T
    w1 = jax.random.uniform(k1, (in1, out1), jnp.float32, -bnd1, bnd1)
    b1 = jax.random.uniform(k2, (1, out1), jnp.float32, -bnd1, bnd1)
    w2 = jax.random.uniform(k3, (in2, out2), jnp.float32, -bnd2, bnd2)
    b2 = jax.random.uniform(k4, (1, out2), jnp.float32, -bnd2, bnd2)
    return w1, b1, w2, b2


if __name__ == "__main__":
    class_num = 10
    batch = 8

    key = jax.random.PRNGKey(0)
    kx, kp = jax.random.split(key)
    x = jax.random.normal(kx, (batch, 200), jnp.float32)
    w1, b1, w2, b2 = init_params(kp, class_num)

    out = spec2state(x, w1, b1, w2, b2)
    out = jax.block_until_ready(out)

    # Pure-f32 reference of the same math (kernel uses bf16 inputs + f32 accumulation,
    # so allow bf16-level tolerance).
    ref = jnp.maximum(x @ w1 + b1, 0.0) @ w2 + b2
    assert out.shape == (batch, class_num)
    assert jnp.allclose(out, ref, atol=3e-2, rtol=3e-2)

    print("KERNEL_OK")
</pallas_src>

<mosaic_0001>
module attributes {stable_mosaic.version = 11 : i64} {
  func.func @spec2state_kernel(%arg0: i32, %arg1: memref<8x256xbf16, #tpu.memory_space<vmem>>, %arg2: memref<256x512xbf16, #tpu.memory_space<vmem>>, %arg3: memref<1x512xf32, #tpu.memory_space<vmem>>, %arg4: memref<512x128xbf16, #tpu.memory_space<vmem>>, %arg5: memref<1x128xf32, #tpu.memory_space<vmem>>, %arg6: memref<8x128xf32, #tpu.memory_space<vmem>>) attributes {dimension_semantics = [#tpu.dimension_semantics<parallel>], iteration_bounds = array<i64: 1>, scalar_prefetch = 0 : i64, scratch_operands = 0 : i64, tpu.core_type = #tpu.core_type<tc>, window_params = [{transform_indices = @transform_0, window_bounds = array<i64: 8, 256>}, {pipeline_mode = #tpu.pipeline_mode<synchronous>, transform_indices = @transform_1, window_bounds = array<i64: 256, 512>}, {pipeline_mode = #tpu.pipeline_mode<synchronous>, transform_indices = @transform_2, window_bounds = array<i64: 1, 512>}, {pipeline_mode = #tpu.pipeline_mode<synchronous>, transform_indices = @transform_3, window_bounds = array<i64: 512, 128>}, {pipeline_mode = #tpu.pipeline_mode<synchronous>, transform_indices = @transform_4, window_bounds = array<i64: 1, 128>}, {transform_indices = @transform_5, window_bounds = array<i64: 8, 128>}]} {
    %c0 = arith.constant 0 : index
    %c0_0 = arith.constant 0 : index
    %0 = vector.load %arg1[%c0, %c0_0] : memref<8x256xbf16, #tpu.memory_space<vmem>>, vector<8x256xbf16>
    %c0_1 = arith.constant 0 : index
    %c0_2 = arith.constant 0 : index
    %1 = vector.load %arg2[%c0_1, %c0_2] : memref<256x512xbf16, #tpu.memory_space<vmem>>, vector<256x512xbf16>
    %cst = arith.constant dense<0.000000e+00> : vector<8x512xf32>
    %2 = tpu.matmul %0, %1, %cst {dimension_numbers = #tpu.dot_dimension_numbers<[1], [0], [0], [1], [0, 0, 1, 1], [], []>} : vector<8x256xbf16>, vector<256x512xbf16>, vector<8x512xf32> -> vector<8x512xf32>
    %c0_3 = arith.constant 0 : index
    %c0_4 = arith.constant 0 : index
    %3 = vector.load %arg3[%c0_3, %c0_4] : memref<1x512xf32, #tpu.memory_space<vmem>>, vector<1x512xf32>
    %4 = vector.broadcast %3 : vector<1x512xf32> to vector<8x512xf32>
    %5 = arith.addf %2, %4 : vector<8x512xf32>
    %cst_5 = arith.constant 0.000000e+00 : f32
    %6 = vector.broadcast %cst_5 : f32 to vector<8x512xf32>
    %7 = arith.maximumf %5, %6 : vector<8x512xf32>
    %8 = arith.truncf %7 : vector<8x512xf32> to vector<8x512xbf16>
    %c0_6 = arith.constant 0 : index
    %c0_7 = arith.constant 0 : index
    %9 = vector.load %arg4[%c0_6, %c0_7] : memref<512x128xbf16, #tpu.memory_space<vmem>>, vector<512x128xbf16>
    %cst_8 = arith.constant dense<0.000000e+00> : vector<8x128xf32>
    %10 = tpu.matmul %8, %9, %cst_8 {dimension_numbers = #tpu.dot_dimension_numbers<[1], [0], [0], [1], [0, 0, 1, 1], [], []>} : vector<8x512xbf16>, vector<512x128xbf16>, vector<8x128xf32> -> vector<8x128xf32>
    %c0_9 = arith.constant 0 : index
    %c0_10 = arith.constant 0 : index
    %11 = vector.load %arg5[%c0_9, %c0_10] : memref<1x128xf32, #tpu.memory_space<vmem>>, vector<1x128xf32>
    %12 = vector.broadcast %11 : vector<1x128xf32> to vector<8x128xf32>
    %13 = arith.addf %10, %12 : vector<8x128xf32>
    %c0_11 = arith.constant 0 : index
    %c0_12 = arith.constant 0 : index
    %14 = vector.load %arg6[%c0_11, %c0_12] : memref<8x128xf32, #tpu.memory_space<vmem>>, vector<8x128xf32>
    tpu.vector_store %arg6[%c0_11, %c0_12], %13 {strides = array<i32>} : memref<8x128xf32, #tpu.memory_space<vmem>>, vector<8x128xf32>,
    return
  }
  func.func @transform_0(%arg0: i32) -> (i32, i32) {
    %c0_i32 = arith.constant 0 : i32
    %c0_i32_0 = arith.constant 0 : i32
    return %arg0, %c0_i32 : i32, i32
  }
  func.func @transform_1(%arg0: i32) -> (i32, i32) {
    %c0_i32 = arith.constant 0 : i32
    %c0_i32_0 = arith.constant 0 : i32
    %c0_i32_1 = arith.constant 0 : i32
    return %c0_i32, %c0_i32_0 : i32, i32
  }
  func.func @transform_2(%arg0: i32) -> (i32, i32) {
    %c0_i32 = arith.constant 0 : i32
    %c0_i32_0 = arith.constant 0 : i32
    %c0_i32_1 = arith.constant 0 : i32
    return %c0_i32, %c0_i32_0 : i32, i32
  }
  func.func @transform_3(%arg0: i32) -> (i32, i32) {
    %c0_i32 = arith.constant 0 : i32
    %c0_i32_0 = arith.constant 0 : i32
    %c0_i32_1 = arith.constant 0 : i32
    return %c0_i32, %c0_i32_0 : i32, i32
  }
  func.func @transform_4(%arg0: i32) -> (i32, i32) {
    %c0_i32 = arith.constant 0 : i32
    %c0_i32_0 = arith.constant 0 : i32
    %c0_i32_1 = arith.constant 0 : i32
    return %c0_i32, %c0_i32_0 : i32, i32
  }
  func.func @transform_5(%arg0: i32) -> (i32, i32) {
    %c0_i32 = arith.constant 0 : i32
    %c0_i32_0 = arith.constant 0 : i32
    return %arg0, %c0_i32 : i32, i32
  }
}

</mosaic_0001>

<bundles_post_ra>
// kernel: tpu_custom_call.1
= control target key start
LH: loop header
LB: loop body
LE: loop exit
PB: predicated region body
PF: predicated region fallthrough
CT: control target
= control target key end

     0   :  { %10 = vsyncpa [#allocation3], 0  ;;  %s1392_s0 = inlined_call_operand.hbm [shape: bf16[8,256], index: 0, kind: input, shape index: {}]   ;;  %s1393_s1 = inlined_call_operand.hbm [shape: bf16[256,512], index: 1, kind: input, shape index: {}]   ;;  %s1394_s2 = inlined_call_operand.vmem [shape: f32[1,512], index: 2, kind: input, shape index: {}]   ;;  %s1395_s3 = inlined_call_operand.hbm [shape: bf16[512,128], index: 3, kind: input, shape index: {}]   ;;  %s1396_s4 = inlined_call_operand.vmem [shape: f32[1,128], index: 4, kind: input, shape index: {}]   ;;  %s1397_s5 = inlined_call_operand.hbm [shape: f32[8,128], index: 5, kind: output, shape index: {}]  }
   0x1   :  { %11 = vsyncpa [#allocation6], 0 }
   0x2   :  { %12 = vsyncpa [#allocation4], 0  ;;  %s1300_s18 = smov [#allocation5]   ;;  %s1206_s22 = scalar_lea.hbm %s1393_s1, 8192 }
   0x3   :  { %s28_s19 = sshll.u32 %s1300_s18, 4  ;;  %p1207_p0 = scmp.ne.s32.totalorder %s1393_s1, %s1206_s22  ;;  %s29_s19 = int_to_ptr.vmem [resolvable:$true] %s28_s19 }
   0x4   :  { %p1210_p1 = scmp.lt.u32.totalorder %s1206_s22, %s1393_s1 }
   0x6   :  { %p1212_p2 = pnand %p1210_p1, %p1207_p0 }
   0x8   :  { %1215 = shalt.err (!%p1212_p2)
}
   0x9   :  { %s1216_s27 = scalar_lea.vmem %s29_s19, 8192  ;;  %p1221_p4 = scmp.lt.s32.totalorder %s29_s19, %s29_s19 }
   0xa   :  { %p1217_p3 = scmp.ne.s32.totalorder %s29_s19, %s1216_s27  ;;  %p1222_p5 = scmp.lt.s32.totalorder %s1216_s27, %s1216_s27 }
   0xc   :  { %p1223_p6 = por %p1222_p5, %p1221_p4 }
   0xe   :  { %p1224_p7 = pnand %p1223_p6, %p1217_p3 }
  0x10   :  { %1227 = shalt.err (!%p1224_p7)
}
  0x11   :  { %s1301_s28 = smov 256   ;;  %s1302_s29 = smov 16  }
  0x12   :  { %34 = dma.hbm_to_vmem [thread:$0]  %s1393_s1, 8192, %s29_s19, [#allocation6], %s1301_s28, %s1301_s28, %s1302_s29  }
  0x13   :  { %s1303_s7 = smov [#allocation2]   ;;  %s1304_s9 = smov [#allocation7]  }
  0x14   :  { %s19_s8 = sshll.u32 %s1303_s7, 4  ;;  %s42_s10 = sshll.u32 %s1304_s9, 4  ;;  %s20_s8 = int_to_ptr.vmem [resolvable:$true] %s19_s8  ;;  %s43_s10 = int_to_ptr.vmem [resolvable:$true] %s42_s10 }
  0x15   :  { %s1228_s13 = scalar_lea.hbm %s1392_s0, 128 }
  0x16   :  { %p1229_p8 = scmp.ne.s32.totalorder %s1392_s0, %s1228_s13  ;;  %p1232_p9 = scmp.lt.u32.totalorder %s1228_s13, %s1392_s0 }
  0x18   :  { %p1234_p10 = pnand %p1232_p9, %p1229_p8 }
  0x1a   :  { %1237 = shalt.err (!%p1234_p10)
}
  0x1b   :  { %s1238_s1 = scalar_lea.vmem %s20_s8, 128  ;;  %p1243_p12 = scmp.lt.s32.totalorder %s20_s8, %s20_s8 }
  0x1c   :  { %p1239_p11 = scmp.ne.s32.totalorder %s20_s8, %s1238_s1  ;;  %p1244_p13 = scmp.lt.s32.totalorder %s1238_s1, %s1238_s1 }
  0x1e   :  { %p1245_p0 = por %p1244_p13, %p1243_p12 }
  0x20   :  { %p1246_p1 = pnand %p1245_p0, %p1239_p11 }
  0x22   :  { %1249 = shalt.err (!%p1246_p1)
}
  0x23   :  { %22 = dma.hbm_to_vmem [thread:$0]  %s1392_s0, 128, %s20_s8, [#allocation3]  }
  0x24   :  { %s1250_s22 = scalar_lea.hbm %s1395_s3, 4096 }
  0x25   :  { %p1251_p2 = scmp.ne.s32.totalorder %s1395_s3, %s1250_s22  ;;  %p1254_p3 = scmp.lt.u32.totalorder %s1250_s22, %s1395_s3 }
  0x27   :  { %p1256_p4 = pnand %p1254_p3, %p1251_p2 }
  0x29   :  { %1259 = shalt.err (!%p1256_p4)
}
  0x2a   :  { %s1260_s27 = scalar_lea.vmem %s43_s10, 4096  ;;  %p1265_p6 = scmp.lt.s32.totalorder %s43_s10, %s43_s10 }
  0x2b   :  { %p1261_p5 = scmp.ne.s32.totalorder %s43_s10, %s1260_s27  ;;  %p1266_p7 = scmp.lt.s32.totalorder %s1260_s27, %s1260_s27 }
  0x2d   :  { %p1267_p8 = por %p1266_p7, %p1265_p6 }
  0x2f   :  { %p1268_p9 = pnand %p1267_p8, %p1261_p5 }
  0x31   :  { %1271 = shalt.err (!%p1268_p9)
}
  0x32   :  { %s1305_s0 = smov 64   ;;  %s1306_s28 = smov 4  }
  0x33   :  { %48 = dma.hbm_to_vmem [thread:$0]  %s1395_s3, 4096, %s43_s10, [#allocation6], %s1305_s0, %s1305_s0, %s1306_s28  }
  0x34   :  { %1294 = dma.done.wait [#allocation3], 128  }
  0x35   :  { %1295 = vsyncadd [#allocation3], 4294967168 }
  0x36   :  { %1296 = dma.done.wait [#allocation6], 12288  }
  0x37   :  { %1297 = vsyncadd [#allocation6], 4294955008  ;;  %v1076_v0 = vld [vmem:[#allocation5 + $0x4] ss:$16 sps:$4 sm:$0xff]   ;;  %v1078_v1 = vld [vmem:[#allocation5 + $0xc] ss:$16 sps:$4 sm:$0xff]  }
  0x38   :  { %475 = vmatprep.subr.bf16.mxu0 %v1076_v0  ;;  %v1080_v2 = vld [vmem:[#allocation5] ss:$16 sps:$4 sm:$0xff]   ;;  %v1081_v3 = vld [vmem:[#allocation5 + $0x8] ss:$16 sps:$4 sm:$0xff]   ;;  %516 = vmatprep.subr.bf16.mxu1 %v1078_v1  ;;  %v1082_v4 = vld [vmem:[#allocation5 + $0x24] ss:$16 sps:$4 sm:$0xff]  }
  0x39   :  { %476 = vmatpush1.bf16.msra.mxu0 %v1080_v2  ;;  %517 = vmatpush1.bf16.msra.mxu1 %v1081_v3  ;;  %v1084_v5 = vld [vmem:[#allocation5 + $0x2c] ss:$16 sps:$4 sm:$0xff]   ;;  %v1086_v6 = vld [vmem:[#allocation5 + $0x20] ss:$16 sps:$4 sm:$0xff]   ;;  %v1087_v7 = vld [vmem:[#allocation5 + $0x28] ss:$16 sps:$4 sm:$0xff]  }
  0x3a   :  { %477 = vmatprep.subr.bf16.mxu0 %v1082_v4  ;;  %518 = vmatprep.subr.bf16.mxu1 %v1084_v5  ;;  %v1088_v8 = vld [vmem:[#allocation5 + $0x44] ss:$16 sps:$4 sm:$0xff]   ;;  %v1090_v9 = vld [vmem:[#allocation5 + $0x4c] ss:$16 sps:$4 sm:$0xff]   ;;  %v1092_v10 = vld [vmem:[#allocation5 + $0x40] ss:$16 sps:$4 sm:$0xff]  }
  0x3b   :  { %v1093_v11 = vld [vmem:[#allocation5 + $0x48] ss:$16 sps:$4 sm:$0xff]   ;;  %v1094_v12 = vld [vmem:[#allocation5 + $0x64] ss:$16 sps:$4 sm:$0xff]   ;;  %v1096_v13 = vld [vmem:[#allocation5 + $0x6c] ss:$16 sps:$4 sm:$0xff]  }
  0x3c   :  { %v1098_v14 = vld [vmem:[#allocation5 + $0x60] ss:$16 sps:$4 sm:$0xff]   ;;  %v1099_v15 = vld [vmem:[#allocation5 + $0x68] ss:$16 sps:$4 sm:$0xff]   ;;  %v1100_v16 = vld [vmem:[#allocation5 + $0x84] ss:$16 sps:$4 sm:$0xff]  }
  0x3d   :  { %478 = vmatpush1.bf16.msra.mxu0 %v1086_v6  ;;  %519 = vmatpush1.bf16.msra.mxu1 %v1087_v7  ;;  %v1102_v17 = vld [vmem:[#allocation5 + $0x8c] ss:$16 sps:$4 sm:$0xff]   ;;  %v1104_v18 = vld [vmem:[#allocation5 + $0x80] ss:$16 sps:$4 sm:$0xff]   ;;  %v1105_v19 = vld [vmem:[#allocation5 + $0x88] ss:$16 sps:$4 sm:$0xff]  }
  0x3e   :  { %479 = vmatprep.subr.bf16.mxu0 %v1088_v8  ;;  %520 = vmatprep.subr.bf16.mxu1 %v1090_v9  ;;  %v1106_v20 = vld [vmem:[#allocation5 + $0xa4] ss:$16 sps:$4 sm:$0xff]   ;;  %v1108_v21 = vld [vmem:[#allocation5 + $0xac] ss:$16 sps:$4 sm:$0xff]   ;;  %v1110_v22 = vld [vmem:[#allocation5 + $0xa0] ss:$16 sps:$4 sm:$0xff]  }
  0x3f   :  { %v1111_v23 = vld [vmem:[#allocation5 + $0xa8] ss:$16 sps:$4 sm:$0xff]   ;;  %v1112_v24 = vld [vmem:[#allocation5 + $0xc4] ss:$16 sps:$4 sm:$0xff]   ;;  %v1114_v25 = vld [vmem:[#allocation5 + $0xcc] ss:$16 sps:$4 sm:$0xff]  }
  0x40   :  { %v1116_v26 = vld [vmem:[#allocation5 + $0xc0] ss:$16 sps:$4 sm:$0xff]   ;;  %v1117_v27 = vld [vmem:[#allocation5 + $0xc8] ss:$16 sps:$4 sm:$0xff]   ;;  %v1118_v28 = vld [vmem:[#allocation5 + $0xe4] ss:$16 sps:$4 sm:$0xff]  }
  0x41   :  { %480 = vmatpush1.bf16.msra.mxu0 %v1092_v10  ;;  %521 = vmatpush1.bf16.msra.mxu1 %v1093_v11  ;;  %v1120_v29 = vld [vmem:[#allocation5 + $0xec] ss:$16 sps:$4 sm:$0xff]   ;;  %v1122_v30 = vld [vmem:[#allocation5 + $0xe0] ss:$16 sps:$4 sm:$0xff]   ;;  %v1123_v31 = vld [vmem:[#allocation5 + $0xe8] ss:$16 sps:$4 sm:$0xff]  }
  0x42   :  { %481 = vmatprep.subr.bf16.mxu0 %v1094_v12  ;;  %522 = vmatprep.subr.bf16.mxu1 %v1096_v13  ;;  %v1124_v32 = vld [vmem:[#allocation5 + $0x104] ss:$16 sps:$4 sm:$0xff]   ;;  %v1126_v33 = vld [vmem:[#allocation5 + $0x10c] ss:$16 sps:$4 sm:$0xff]   ;;  %v1128_v34 = vld [vmem:[#allocation5 + $0x100] ss:$16 sps:$4 sm:$0xff]  }
  0x43   :  { %v1129_v35 = vld [vmem:[#allocation5 + $0x108] ss:$16 sps:$4 sm:$0xff]   ;;  %v1130_v36 = vld [vmem:[#allocation5 + $0x124] ss:$16 sps:$4 sm:$0xff]   ;;  %v1132_v37 = vld [vmem:[#allocation5 + $0x12c] ss:$16 sps:$4 sm:$0xff]  }
  0x44   :  { %v1134_v38 = vld [vmem:[#allocation5 + $0x120] ss:$16 sps:$4 sm:$0xff]   ;;  %v1135_v39 = vld [vmem:[#allocation5 + $0x128] ss:$16 sps:$4 sm:$0xff]   ;;  %v1136_v40 = vld [vmem:[#allocation5 + $0x144] ss:$16 sps:$4 sm:$0xff]  }
  0x45   :  { %482 = vmatpush1.bf16.msra.mxu0 %v1098_v14  ;;  %523 = vmatpush1.bf16.msra.mxu1 %v1099_v15  ;;  %v1138_v41 = vld [vmem:[#allocation5 + $0x14c] ss:$16 sps:$4 sm:$0xff]   ;;  %v1140_v42 = vld [vmem:[#allocation5 + $0x140] ss:$16 sps:$4 sm:$0xff]   ;;  %v1141_v43 = vld [vmem:[#allocation5 + $0x148] ss:$16 sps:$4 sm:$0xff]  }
  0x46   :  { %483 = vmatprep.subr.bf16.mxu0 %v1100_v16  ;;  %524 = vmatprep.subr.bf16.mxu1 %v1102_v17  ;;  %v1142_v44 = vld [vmem:[#allocation5 + $0x164] ss:$16 sps:$4 sm:$0xff]   ;;  %v1144_v45 = vld [vmem:[#allocation5 + $0x16c] ss:$16 sps:$4 sm:$0xff]   ;;  %v1146_v46 = vld [vmem:[#allocation5 + $0x160] ss:$16 sps:$4 sm:$0xff]  }
  0x47   :  { %v61_v47 = vld [vmem:[#allocation2] sm:$0xff]  ;;  %v1148_v50 = vld [vmem:[#allocation5 + $0x184] ss:$16 sps:$4 sm:$0xff]   ;;  %v1152_v52 = vld [vmem:[#allocation5 + $0x180] ss:$16 sps:$4 sm:$0xff]   ;;  %s1307_s8 = smov [#allocation8]  }
  0x48   :  { %v1147_v48 = vld [vmem:[#allocation5 + $0x168] ss:$16 sps:$4 sm:$0xff]   ;;  %v926_v49 = vcombine.high %v61_v47, %v61_v47  ;;  %v1150_v51 = vld [vmem:[#allocation5 + $0x18c] ss:$16 sps:$4 sm:$0xff]   ;;  %v1154_v54 = vld [vmem:[#allocation5 + $0x1a4] ss:$16 sps:$4 sm:$0xff]   ;;  %v925_v5 = vcombine.low %v61_v47, %v61_v47 }
  0x49   :  { %484 = vmatpush1.bf16.msra.mxu0 %v1104_v18  ;;  %525 = vmatpush1.bf16.msra.mxu1 %v1105_v19  ;;  %v1153_v53 = vld [vmem:[#allocation5 + $0x188] ss:$16 sps:$4 sm:$0xff]   ;;  %v1156_v55 = vld [vmem:[#allocation5 + $0x1ac] ss:$16 sps:$4 sm:$0xff]   ;;  %v1158_v56 = vld [vmem:[#allocation5 + $0x1a0] ss:$16 sps:$4 sm:$0xff]  }
  0x4a   :  { %485 = vmatprep.subr.bf16.mxu0 %v1106_v20  ;;  %526 = vmatprep.subr.bf16.mxu1 %v1108_v21  ;;  %v1159_v57 = vld [vmem:[#allocation5 + $0x1a8] ss:$16 sps:$4 sm:$0xff]   ;;  %v1160_v58 = vld [vmem:[#allocation5 + $0x1c4] ss:$16 sps:$4 sm:$0xff]   ;;  %v1162_v59 = vld [vmem:[#allocation5 + $0x1cc] ss:$16 sps:$4 sm:$0xff]  }
  0x4b   :  { %507 = vmatprep.mubr.bf16.mxu0 %v926_v49  ;;  %548 = vmatprep.mubr.bf16.mxu1 %v926_v49  ;;  %v1164_v60 = vld [vmem:[#allocation5 + $0x1c0] ss:$16 sps:$4 sm:$0xff]   ;;  %v1165_v61 = vld [vmem:[#allocation5 + $0x1c8] ss:$16 sps:$4 sm:$0xff]   ;;  %v1166_v62 = vld [vmem:[#allocation5 + $0x1e4] ss:$16 sps:$4 sm:$0xff]  }
  0x4c   :  { %v1168_v63 = vld [vmem:[#allocation5 + $0x1ec] ss:$16 sps:$4 sm:$0xff]   ;;  %v1170_v0 = vld [vmem:[#allocation5 + $0x1e0] ss:$16 sps:$4 sm:$0xff]   ;;  %v1171_v1 = vld [vmem:[#allocation5 + $0x1e8] ss:$16 sps:$4 sm:$0xff]  }
  0x4d   :  { %486 = vmatpush1.bf16.msra.mxu0 %v1110_v22  ;;  %527 = vmatpush1.bf16.msra.mxu1 %v1111_v23  ;;  %v1174_v2 = vld [vmem:[#allocation7 + $0x40] sm:$0xff]   ;;  %v1178_v7 = vld [vmem:[#allocation7 + $0x48] sm:$0xff]   ;;  %v1182_v11 = vld [vmem:[#allocation7 + $0x50] sm:$0xff]   ;;  %s915_s9 = sshll.u32 %s1307_s8, 4  ;;  %s916_s9 = int_to_ptr.vmem [resolvable:$true] %s915_s9 }
  0x4e   :  { %487 = vmatprep.subr.bf16.mxu0 %v1112_v24  ;;  %528 = vmatprep.subr.bf16.mxu1 %v1114_v25  ;;  %v1175_v3 = vld [vmem:[#allocation7 + $0xc0] sm:$0xff]   ;;  %v1179_v8 = vld [vmem:[#allocation7 + $0xc8] sm:$0xff]   ;;  %v1183_v12 = vld [vmem:[#allocation7 + $0xd0] sm:$0xff]   ;;  %s1272_s10 = scalar_lea.vmem %s916_s9, 128  ;;  %p1277_p11 = scmp.lt.s32.totalorder %s916_s9, %s916_s9 }
  0x4f   :  { %v1176_v4 = vld [vmem:[#allocation7] sm:$0xff]   ;;  %v1180_v9 = vld [vmem:[#allocation7 + $0x8] sm:$0xff]   ;;  %v1184_v13 = vld [vmem:[#allocation7 + $0x10] sm:$0xff]   ;;  %p1273_p10 = scmp.ne.s32.totalorder %s916_s9, %s1272_s10  ;;  %p1278_p12 = scmp.lt.s32.totalorder %s1272_s10, %s1272_s10 }
  0x50   :  { %v1177_v6 = vld [vmem:[#allocation7 + $0x80] sm:$0xff]   ;;  %v1181_v10 = vld [vmem:[#allocation7 + $0x88] sm:$0xff]   ;;  %v1185_v14 = vld [vmem:[#allocation7 + $0x90] sm:$0xff]  }
  0x51   :  { %488 = vmatpush1.bf16.msra.mxu0 %v1116_v26  ;;  %529 = vmatpush1.bf16.msra.mxu1 %v1117_v27  ;;  %v1186_v15 = vld [vmem:[#allocation7 + $0x58] sm:$0xff]   ;;  %v1190_v19 = vld [vmem:[#allocation7 + $0x60] sm:$0xff]   ;;  %v1194_v23 = vld [vmem:[#allocation7 + $0x68] sm:$0xff]   ;;  %p1279_p13 = por %p1278_p12, %p1277_p11 }
  0x52   :  { %489 = vmatprep.subr.bf16.mxu0 %v1118_v28  ;;  %530 = vmatprep.subr.bf16.mxu1 %v1120_v29  ;;  %v1187_v16 = vld [vmem:[#allocation7 + $0xd8] sm:$0xff]   ;;  %v1191_v20 = vld [vmem:[#allocation7 + $0xe0] sm:$0xff]   ;;  %v1195_v24 = vld [vmem:[#allocation7 + $0xe8] sm:$0xff]  }
  0x53   :  { %v1188_v17 = vld [vmem:[#allocation7 + $0x18] sm:$0xff]   ;;  %v1192_v21 = vld [vmem:[#allocation7 + $0x20] sm:$0xff]   ;;  %v1196_v25 = vld [vmem:[#allocation7 + $0x28] sm:$0xff]   ;;  %p1280_p0 = pnand %p1279_p13, %p1273_p10 }
  0x54   :  { %v1189_v18 = vld [vmem:[#allocation7 + $0x98] sm:$0xff]   ;;  %v1193_v22 = vld [vmem:[#allocation7 + $0xa0] sm:$0xff]   ;;  %v1197_v26 = vld [vmem:[#allocation7 + $0xa8] sm:$0xff]  }
  0x55   :  { %490 = vmatpush1.bf16.msra.mxu0 %v1122_v30  ;;  %531 = vmatpush1.bf16.msra.mxu1 %v1123_v31  ;;  %v1198_v27 = vld [vmem:[#allocation7 + $0x70] sm:$0xff]   ;;  %v1202_v31 = vld [vmem:[#allocation7 + $0x78] sm:$0xff]  }
  0x56   :  { %491 = vmatprep.subr.bf16.mxu0 %v1124_v32  ;;  %532 = vmatprep.subr.bf16.mxu1 %v1126_v33  ;;  %v1199_v28 = vld [vmem:[#allocation7 + $0xf0] sm:$0xff]   ;;  %v1203_v32 = vld [vmem:[#allocation7 + $0xf8] sm:$0xff]  }
  0x57   :  { %v1200_v29 = vld [vmem:[#allocation7 + $0x30] sm:$0xff]   ;;  %v1204_v33 = vld [vmem:[#allocation7 + $0x38] sm:$0xff]  }
  0x58   :  { %v1201_v30 = vld [vmem:[#allocation7 + $0xb0] sm:$0xff]  }
  0x59   :  { %492 = vmatpush1.bf16.msra.mxu0 %v1128_v34  ;;  %533 = vmatpush1.bf16.msra.mxu1 %v1129_v35  ;;  %v1205_v34 = vld [vmem:[#allocation7 + $0xb8] sm:$0xff]   ;;  %v128_v35 = vlaneseq }
  0x5a   :  { %493 = vmatprep.subr.bf16.mxu0 %v1130_v36  ;;  %534 = vmatprep.subr.bf16.mxu1 %v1132_v37 }
  0x5b   :  { %v129_v36 = vshrl.u32 %v128_v35, 7 }
  0x5d   :  { %494 = vmatpush1.bf16.msra.mxu0 %v1134_v38  ;;  %535 = vmatpush1.bf16.msra.mxu1 %v1135_v39  ;;  %v130_v37 = vsub.s32 0, %v129_v36  ;;  %v138_v38 = vsub.s32 2, %v129_v36  ;;  %v126_v39 = vld [vmem:[%s1394_s2] sm:$0xf] }
  0x5e   :  { %495 = vmatprep.subr.bf16.mxu0 %v1136_v40  ;;  %536 = vmatprep.subr.bf16.mxu1 %v1138_v41  ;;  %v134_v40 = vsub.s32 1, %v129_v36  ;;  %v142_v41 = vsub.s32 3, %v129_v36 }
  0x61   :  { %496 = vmatpush1.bf16.msra.mxu0 %v1140_v42  ;;  %537 = vmatpush1.bf16.msra.mxu1 %v1141_v43  ;;  %v131_v42 = vrot.slane %v126_v39, %v130_v37  ;;  %v139_v43 = vrot.slane %v126_v39, %v138_v38 }
  0x62   :  { %497 = vmatprep.subr.bf16.mxu0 %v1142_v44  ;;  %538 = vmatprep.subr.bf16.mxu1 %v1144_v45  ;;  %v135_v44 = vrot.slane %v126_v39, %v134_v40  ;;  %v143_v45 = vrot.slane %v126_v39, %v142_v41 }
  0x65   :  { %498 = vmatpush1.bf16.msra.mxu0 %v1146_v46  ;;  %539 = vmatpush1.bf16.msra.mxu1 %v1147_v48 }
  0x66   :  { %499 = vmatprep.subr.bf16.mxu0 %v1148_v50  ;;  %540 = vmatprep.subr.bf16.mxu1 %v1150_v51 }
  0x69   :  { %500 = vmatpush1.bf16.msra.mxu0 %v1152_v52  ;;  %541 = vmatpush1.bf16.msra.mxu1 %v1153_v53 }
  0x6a   :  { %501 = vmatprep.subr.bf16.mxu0 %v1154_v54  ;;  %542 = vmatprep.subr.bf16.mxu1 %v1156_v55 }
  0x6d   :  { %502 = vmatpush1.bf16.msra.mxu0 %v1158_v56  ;;  %543 = vmatpush1.bf16.msra.mxu1 %v1159_v57 }
  0x6e   :  { %503 = vmatprep.subr.bf16.mxu0 %v1160_v58  ;;  %544 = vmatprep.subr.bf16.mxu1 %v1162_v59 }
  0x71   :  { %504 = vmatpush1.bf16.msra.mxu0 %v1164_v60  ;;  %545 = vmatpush1.bf16.msra.mxu1 %v1165_v61 }
  0x72   :  { %505 = vmatprep.subr.bf16.mxu0 %v1166_v62  ;;  %546 = vmatprep.subr.bf16.mxu1 %v1168_v63 }
  0x75   :  { %506 = vmatpush1.bf16.msra.mxu0 %v1170_v0  ;;  %547 = vmatpush1.bf16.msra.mxu1 %v1171_v1 }
  0x76   :  { %1024 = vmatprep.subr.bf16.mxu0 %v1174_v2  ;;  %1046 = vmatprep.subr.bf16.mxu1 %v1175_v3 }
  0x78   :  { %508 = vmatmul.mubr.bf16.vlgmr.msra.gmra.mrb[0].mxu0 %v925_v5  ;;  %549 = vmatmul.mubr.bf16.vlgmr.msra.gmra.mrb[0].mxu1 %v925_v5 }
  0x79   :  { %1025 = vmatpush3.bf16.msra.mxu0 %v1176_v4  ;;  %1047 = vmatpush3.bf16.msra.mxu1 %v1177_v6  ;;  %v991_v4 = vld [vmem:[%s1396_s4] ss:$0 sm:$0xff] }
  0x7a   :  { %1026 = vmatprep.subr.bf16.mxu0 %v1178_v7  ;;  %1048 = vmatprep.subr.bf16.mxu1 %v1179_v8 }
  0x7d   :  { %1027 = vmatpush3.bf16.msra.mxu0 %v1180_v9  ;;  %1049 = vmatpush3.bf16.msra.mxu1 %v1181_v10 }
  0x7e   :  { %1028 = vmatprep.subr.bf16.mxu0 %v1182_v11  ;;  %1050 = vmatprep.subr.bf16.mxu1 %v1183_v12 }
  0x81   :  { %1029 = vmatpush3.bf16.msra.mxu0 %v1184_v13  ;;  %1051 = vmatpush3.bf16.msra.mxu1 %v1185_v14 }
  0x82   :  { %1030 = vmatprep.subr.bf16.mxu0 %v1186_v15  ;;  %1052 = vmatprep.subr.bf16.mxu1 %v1187_v16 }
  0x85   :  { %1031 = vmatpush3.bf16.msra.mxu0 %v1188_v17  ;;  %1053 = vmatpush3.bf16.msra.mxu1 %v1189_v18 }
  0x86   :  { %1032 = vmatprep.subr.bf16.mxu0 %v1190_v19  ;;  %1054 = vmatprep.subr.bf16.mxu1 %v1191_v20 }
  0x89   :  { %1033 = vmatpush3.bf16.msra.mxu0 %v1192_v21  ;;  %1055 = vmatpush3.bf16.msra.mxu1 %v1193_v22 }
  0x8a   :  { %1034 = vmatprep.subr.bf16.mxu0 %v1194_v23  ;;  %1056 = vmatprep.subr.bf16.mxu1 %v1195_v24 }
  0x8d   :  { %1035 = vmatpush3.bf16.msra.mxu0 %v1196_v25  ;;  %1057 = vmatpush3.bf16.msra.mxu1 %v1197_v26 }
  0x8e   :  { %1036 = vmatprep.subr.bf16.mxu0 %v1198_v27  ;;  %1058 = vmatprep.subr.bf16.mxu1 %v1199_v28 }
  0x91   :  { %1037 = vmatpush3.bf16.msra.mxu0 %v1200_v29  ;;  %1059 = vmatpush3.bf16.msra.mxu1 %v1201_v30 }
  0x92   :  { %1038 = vmatprep.subr.bf16.mxu0 %v1202_v31  ;;  %1060 = vmatprep.subr.bf16.mxu1 %v1203_v32 }
  0x95   :  { %1039 = vmatpush3.bf16.msra.mxu0 %v1204_v33  ;;  %1061 = vmatpush3.bf16.msra.mxu1 %v1205_v34 }
 0x14b   :  { %v509_v46 = vpop.f32.mrb[0].mxu0  ;;  %v550_v47 = vpop.f32.mrb[0].mxu1 }
 0x14c   :  { %v510_v48 = vadd.f32 %v509_v46, %v131_v42  ;;  %v551_v49 = vadd.f32 %v550_v47, %v139_v43  ;;  %v511_v50 = vpop.f32.mrb[1].mxu0  ;;  %v552_v51 = vpop.f32.mrb[1].mxu1 }
 0x14d   :  { %v512_v52 = vadd.f32 %v511_v50, %v135_v44  ;;  %v553_v53 = vadd.f32 %v552_v51, %v143_v45  ;;  %v513_v54 = vpop.f32.mrb[2].mxu0  ;;  %v554_v55 = vpop.f32.mrb[2].mxu1 }
 0x14e   :  { %v557_v56 = vmax.f32 %v510_v48, 0.0  ;;  %v559_v57 = vmax.f32 %v551_v49, 0.0  ;;  %v514_v58 = vpop.f32.mrb[3].mxu0  ;;  %v555_v59 = vpop.f32.mrb[3].mxu1 }
 0x14f   :  { %v558_v60 = vmax.f32 %v512_v52, 0.0  ;;  %v560_v61 = vmax.f32 %v553_v53, 0.0 }
 0x150   :  { %v563_v62 = vpack.c.bf16 %v559_v57, %v559_v57  ;;  %v561_v1 = vpack.c.bf16 %v557_v56, %v557_v56 }
 0x151   :  { %v562_v63 = vpack.c.bf16 %v558_v60, %v558_v60  ;;  %v564_v0 = vpack.c.bf16 %v560_v61, %v560_v61 }
 0x153   :  { %860 = vmatprep.mubr.bf16.mxu0 %v562_v63  ;;  %900 = vmatprep.mubr.bf16.mxu1 %v564_v0 }
 0x154   :  { %861 = vmatmul.mubr.bf16.vlgmr.msra.gmra.mrb[4].mxu0 %v561_v1  ;;  %901 = vmatmul.mubr.bf16.vlgmr.msra.gmra.mrb[4].mxu1 %v563_v62 }
 0x227   :  { %v1040_v2 = vpop.f32.mrb[4].mxu0  ;;  %v1062_v3 = vpop.f32.mrb[4].mxu1 }
 0x228   :  { %v1041_v5 = vpop.f32.mrb[5].mxu0  ;;  %v1063_v6 = vpop.f32.mrb[5].mxu1 }
 0x229   :  { %v1042_v7 = vadd.f32 %v1041_v5, %v1040_v2  ;;  %v1064_v8 = vadd.f32 %v1063_v6, %v1062_v3  ;;  %v1043_v9 = vpop.f32.mrb[6].mxu0  ;;  %v1065_v10 = vpop.f32.mrb[6].mxu1 }
 0x22a   :  { %v1044_v11 = vpop.f32.mrb[7].mxu0  ;;  %v1066_v12 = vpop.f32.mrb[7].mxu1 }
 0x22b   :  { %v863_v13 = vadd.f32 %v1042_v7, %v991_v4 }
 0x22d   :  { %v903_v14 = vadd.f32 %v1064_v8, %v863_v13 }
 0x22f   :  { %908 = vst [vmem:[#allocation8] sm:$0xff] %v903_v14 }
 0x230   :  { %1283 = shalt.err (!%p1280_p0)
}
 0x231   :  { %s1284_s12 = scalar_lea.hbm %s1397_s5, 128 }
 0x232   :  { %p1285_p1 = scmp.ne.s32.totalorder %s1397_s5, %s1284_s12  ;;  %p1288_p2 = scmp.lt.u32.totalorder %s1284_s12, %s1397_s5 }
 0x234   :  { %p1290_p3 = pnand %p1288_p2, %p1285_p1 }
 0x236   :  { %1293 = shalt.err (!%p1290_p3)
}
 0x237   :  { %918 = dma.vmem_to_hbm [thread:$0]  %s916_s9, 128, %s1397_s5, [#allocation4]  }
 0x238   :  { %1298 = dma.done.wait [#allocation4], 128  }
 0x239   :  { %1299 = vsyncadd [#allocation4], 4294967168 }
 0x23a   :  { %922 = vsyncpa [#allocation3], 1 }
 0x23b   :  { %923 = vsyncpa [#allocation6], 1 }
 0x23c   :  { %924 = vsyncpa [#allocation4], 1 }

</bundles_post_ra>
